<compile_context>
chip_gen: v5e
topology: v5e:2x2
jax: 0.10.0
libtpu: 0.0.40
codegen_flags: <defaults>
</compile_context>

<pallas_src>
import functools

import jax
import jax.numpy as jnp
from jax.experimental import pallas as pl
from jax.experimental.pallas import tpu as pltpu


def _round_up(v, m):
    return (v + m - 1) // m * m


def fc_layer_kernel(x_ref, w_ref, s_ref, t_ref, o_ref, acc_ref, *, negative_slope):
    """One (tm, tn) output tile; K reduced over grid axis 2."""
    k = pl.program_id(2)

    @pl.when(k == 0)
    def _():
        acc_ref[...] = jnp.zeros_like(acc_ref)

    acc_ref[...] += jnp.dot(
        x_ref[...], w_ref[...], preferred_element_type=jnp.float32
    )

    @pl.when(k == pl.num_programs(2) - 1)
    def _():
        # fused epilogue: (x@W)*scale + (bias*scale + shift), then activation
        h = acc_ref[...] * s_ref[...] + t_ref[...]
        if negative_slope == 0.0:
            h = jnp.maximum(h, 0.0)                    # ReLU
        else:
            h = jnp.maximum(h, negative_slope * h)     # LeakyReLU(0.2)
        o_ref[...] = h.astype(o_ref.dtype)


def fc_layer_forward(x, w, bias=None, bn_scale=None, bn_shift=None,
                     activation="relu", tm=128, tn=128, tk=256):
    """x: (M, in_ch) f32, w: (in_ch, out_ch) f32 -> (M, out_ch) f32."""
    assert activation in ("relu", "leakyrelu")
    negative_slope = 0.2 if activation == "leakyrelu" else 0.0

    M, K = x.shape
    Kw, N = w.shape
    assert K == Kw

    # Fold Linear bias and eval-mode BN into a single per-channel scale/shift:
    #   act((x@W + b) * s + t) == act((x@W) * s + (b*s + t))
    scale = (jnp.ones((1, N), jnp.float32) if bn_scale is None
             else bn_scale.reshape(1, N).astype(jnp.float32))
    shift = (jnp.zeros((1, N), jnp.float32) if bn_shift is None
             else bn_shift.reshape(1, N).astype(jnp.float32))
    if bias is not None:
        shift = bias.reshape(1, N).astype(jnp.float32) * scale + shift

    # Pad to sublane/lane-friendly sizes, then to tile multiples.
    M_pad = _round_up(M, 8)
    K_pad = _round_up(K, 128)
    N_pad = _round_up(N, 128)
    tm = min(tm, M_pad)
    tk = min(tk, K_pad)
    tn = min(tn, N_pad)
    M_pad = _round_up(M_pad, tm)
    K_pad = _round_up(K_pad, tk)
    N_pad = _round_up(N_pad, tn)

    # bf16 matmul operands (MXU native), f32 epilogue params.
    x_p = jnp.zeros((M_pad, K_pad), jnp.bfloat16).at[:M, :K].set(
        x.astype(jnp.bfloat16))
    w_p = jnp.zeros((K_pad, N_pad), jnp.bfloat16).at[:K, :N].set(
        w.astype(jnp.bfloat16))
    s_p = jnp.zeros((1, N_pad), jnp.float32).at[:, :N].set(scale)
    t_p = jnp.zeros((1, N_pad), jnp.float32).at[:, :N].set(shift)

    grid = (M_pad // tm, N_pad // tn, K_pad // tk)

    cost = pl.CostEstimate(
        flops=2 * M_pad * K_pad * N_pad,
        transcendentals=0,
        bytes_accessed=(x_p.size * 2 + w_p.size * 2
                        + s_p.size * 4 + t_p.size * 4 + M_pad * N_pad * 4),
    )

    out = pl.pallas_call(
        functools.partial(fc_layer_kernel, negative_slope=negative_slope),
        out_shape=jax.ShapeDtypeStruct((M_pad, N_pad), jnp.float32),
        grid_spec=pltpu.PrefetchScalarGridSpec(
            num_scalar_prefetch=0,
            grid=grid,
            in_specs=[
                pl.BlockSpec((tm, tk), lambda i, j, k: (i, k)),   # x tile
                pl.BlockSpec((tk, tn), lambda i, j, k: (k, j)),   # W tile
                pl.BlockSpec((1, tn), lambda i, j, k: (0, j)),    # scale (resident per j)
                pl.BlockSpec((1, tn), lambda i, j, k: (0, j)),    # shift (resident per j)
            ],
            out_specs=pl.BlockSpec((tm, tn), lambda i, j, k: (i, j)),
            scratch_shapes=[pltpu.VMEM((tm, tn), jnp.float32)],
        ),
        compiler_params=pltpu.CompilerParams(
            dimension_semantics=("parallel", "parallel", "arbitrary"),
        ),
        cost_estimate=cost,
    )(x_p, w_p, s_p, t_p)

    return out[:M, :N]


# ---------------- deterministic parameter construction ----------------
def _bn_fold(key, ch, eps=1e-5):
    k1, k2, k3, k4 = jax.random.split(key, 4)
    gamma = 1.0 + 0.1 * jax.random.normal(k1, (ch,), jnp.float32)
    beta = 0.1 * jax.random.normal(k2, (ch,), jnp.float32)
    rmean = 0.1 * jax.random.normal(k3, (ch,), jnp.float32)
    rvar = 1.0 + 0.2 * jax.random.uniform(k4, (ch,), jnp.float32)
    scale = gamma / jnp.sqrt(rvar + eps)
    shift = beta - rmean * scale
    return scale, shift


# ---------------- pure-JAX reference (for correctness check) ----------------
def reference_forward(x, w, bias=None, bn_scale=None, bn_shift=None,
                      activation="relu"):
    h = jnp.dot(x.astype(jnp.bfloat16), w.astype(jnp.bfloat16),
                preferred_element_type=jnp.float32)
    if bias is not None:
        h = h + bias.reshape(1, -1)
    if bn_scale is not None:
        h = h * bn_scale.reshape(1, -1) + bn_shift.reshape(1, -1)
    if activation == "relu":
        return jnp.maximum(h, 0.0)
    return jnp.maximum(h, 0.2 * h)


if __name__ == "__main__":
    key = jax.random.PRNGKey(0)
    k_x1, k_w1, k_b1, k_bn1, k_x2, k_w2, k_b2 = jax.random.split(key, 7)

    # config 1: fc_layer(in_ch=256, out_ch=128, bn=True, activation='relu', bias=True)
    B1, Cin1, Cout1 = 32, 256, 128
    x1 = jax.random.normal(k_x1, (B1, Cin1), jnp.float32)
    w1 = jax.random.normal(k_w1, (Cin1, Cout1), jnp.float32) / jnp.sqrt(Cin1)
    b1 = 0.05 * jax.random.normal(k_b1, (Cout1,), jnp.float32)
    s1, t1 = _bn_fold(k_bn1, Cout1)

    out1 = jax.block_until_ready(
        fc_layer_forward(x1, w1, bias=b1, bn_scale=s1, bn_shift=t1,
                         activation="relu"))
    ref1 = reference_forward(x1, w1, bias=b1, bn_scale=s1, bn_shift=t1,
                             activation="relu")
    assert out1.shape == (B1, Cout1)
    assert jnp.allclose(out1, ref1, atol=2e-3, rtol=2e-3), "config 1 mismatch"

    # config 2: fc_layer(in_ch=96, out_ch=72, bn=False, activation='leakyrelu',
    # bias=True) -- exercises the pad-to-(8,128) / slice-back path.
    B2, Cin2, Cout2 = 10, 96, 72
    x2 = jax.random.normal(k_x2, (B2, Cin2), jnp.float32)
    w2 = jax.random.normal(k_w2, (Cin2, Cout2), jnp.float32) / jnp.sqrt(Cin2)
    b2 = 0.05 * jax.random.normal(k_b2, (Cout2,), jnp.float32)

    out2 = jax.block_until_ready(
        fc_layer_forward(x2, w2, bias=b2, activation="leakyrelu"))
    ref2 = reference_forward(x2, w2, bias=b2, activation="leakyrelu")
    assert out2.shape == (B2, Cout2)
    assert jnp.allclose(out2, ref2, atol=2e-3, rtol=2e-3), "config 2 mismatch"

    print("KERNEL_OK")
</pallas_src>

<mosaic_0001>
module attributes {stable_mosaic.version = 11 : i64} {
  func.func @fc_layer_kernel(%arg0: i32, %arg1: i32, %arg2: i32, %arg3: memref<32x256xbf16, #tpu.memory_space<vmem>>, %arg4: memref<256x128xbf16, #tpu.memory_space<vmem>>, %arg5: memref<1x128xf32, #tpu.memory_space<vmem>>, %arg6: memref<1x128xf32, #tpu.memory_space<vmem>>, %arg7: memref<32x128xf32, #tpu.memory_space<vmem>>, %arg8: memref<32x128xf32, #tpu.memory_space<vmem>>) attributes {dimension_semantics = [#tpu.dimension_semantics<parallel>, #tpu.dimension_semantics<parallel>, #tpu.dimension_semantics<arbitrary>], iteration_bounds = array<i64: 1, 1, 1>, scalar_prefetch = 0 : i64, scratch_operands = 1 : i64, tpu.core_type = #tpu.core_type<tc>, window_params = [{transform_indices = @transform_0, window_bounds = array<i64: 32, 256>}, {transform_indices = @transform_1, window_bounds = array<i64: 256, 128>}, {transform_indices = @transform_2, window_bounds = array<i64: 1, 128>}, {transform_indices = @transform_3, window_bounds = array<i64: 1, 128>}, {transform_indices = @transform_4, window_bounds = array<i64: 32, 128>}]} {
    %c0_i32 = arith.constant 0 : i32
    %0 = arith.cmpi eq, %arg2, %c0_i32 : i32
    %1 = arith.extui %0 : i1 to i32
    %c0_i32_0 = arith.constant 0 : i32
    %2 = arith.cmpi ne, %1, %c0_i32_0 : i32
    scf.if %2 {
      %cst_10 = arith.constant 0.000000e+00 : f32
      %12 = vector.broadcast %cst_10 : f32 to vector<32x128xf32>
      %c0_11 = arith.constant 0 : index
      %c0_12 = arith.constant 0 : index
      %13 = vector.load %arg8[%c0_11, %c0_12] : memref<32x128xf32, #tpu.memory_space<vmem>>, vector<32x128xf32>
      tpu.vector_store %arg8[%c0_11, %c0_12], %12 {strides = array<i32>} : memref<32x128xf32, #tpu.memory_space<vmem>>, vector<32x128xf32>,
    } else {
    }
    %c0 = arith.constant 0 : index
    %c0_1 = arith.constant 0 : index
    %3 = vector.load %arg8[%c0, %c0_1] : memref<32x128xf32, #tpu.memory_space<vmem>>, vector<32x128xf32>
    %c0_2 = arith.constant 0 : index
    %c0_3 = arith.constant 0 : index
    %4 = vector.load %arg3[%c0_2, %c0_3] : memref<32x256xbf16, #tpu.memory_space<vmem>>, vector<32x256xbf16>
    %c0_4 = arith.constant 0 : index
    %c0_5 = arith.constant 0 : index
    %5 = vector.load %arg4[%c0_4, %c0_5] : memref<256x128xbf16, #tpu.memory_space<vmem>>, vector<256x128xbf16>
    %cst = arith.constant dense<0.000000e+00> : vector<32x128xf32>
    %6 = tpu.matmul %4, %5, %cst {dimension_numbers = #tpu.dot_dimension_numbers<[1], [0], [0], [1], [0, 0, 1, 1], [], []>} : vector<32x256xbf16>, vector<256x128xbf16>, vector<32x128xf32> -> vector<32x128xf32>
    %7 = arith.addf %3, %6 : vector<32x128xf32>
    %c0_6 = arith.constant 0 : index
    %c0_7 = arith.constant 0 : index
    %8 = vector.load %arg8[%c0_6, %c0_7] : memref<32x128xf32, #tpu.memory_space<vmem>>, vector<32x128xf32>
    tpu.vector_store %arg8[%c0_6, %c0_7], %7 {strides = array<i32>} : memref<32x128xf32, #tpu.memory_space<vmem>>, vector<32x128xf32>,
    %c0_i32_8 = arith.constant 0 : i32
    %9 = arith.cmpi eq, %arg2, %c0_i32_8 : i32
    %10 = arith.extui %9 : i1 to i32
    %c0_i32_9 = arith.constant 0 : i32
    %11 = arith.cmpi ne, %10, %c0_i32_9 : i32
    scf.if %11 {
      %c0_10 = arith.constant 0 : index
      %c0_11 = arith.constant 0 : index
      %12 = vector.load %arg8[%c0_10, %c0_11] : memref<32x128xf32, #tpu.memory_space<vmem>>, vector<32x128xf32>
      %c0_12 = arith.constant 0 : index
      %c0_13 = arith.constant 0 : index
      %13 = vector.load %arg5[%c0_12, %c0_13] : memref<1x128xf32, #tpu.memory_space<vmem>>, vector<1x128xf32>
      %14 = vector.broadcast %13 : vector<1x128xf32> to vector<32x128xf32>
      %15 = arith.mulf %12, %14 : vector<32x128xf32>
      %c0_14 = arith.constant 0 : index
      %c0_15 = arith.constant 0 : index
      %16 = vector.load %arg6[%c0_14, %c0_15] : memref<1x128xf32, #tpu.memory_space<vmem>>, vector<1x128xf32>
      %17 = vector.broadcast %16 : vector<1x128xf32> to vector<32x128xf32>
      %18 = arith.addf %15, %17 : vector<32x128xf32>
      %cst_16 = arith.constant 0.000000e+00 : f32
      %19 = vector.broadcast %cst_16 : f32 to vector<32x128xf32>
      %20 = arith.maximumf %18, %19 : vector<32x128xf32>
      %c0_17 = arith.constant 0 : index
      %c0_18 = arith.constant 0 : index
      %21 = vector.load %arg7[%c0_17, %c0_18] : memref<32x128xf32, #tpu.memory_space<vmem>>, vector<32x128xf32>
      tpu.vector_store %arg7[%c0_17, %c0_18], %20 {strides = array<i32>} : memref<32x128xf32, #tpu.memory_space<vmem>>, vector<32x128xf32>,
    } else {
    }
    return
  }
  func.func @transform_0(%arg0: i32, %arg1: i32, %arg2: i32) -> (i32, i32) {
    %c0_i32 = arith.constant 0 : i32
    return %arg0, %arg2 : i32, i32
  }
  func.func @transform_1(%arg0: i32, %arg1: i32, %arg2: i32) -> (i32, i32) {
    %c0_i32 = arith.constant 0 : i32
    return %arg2, %arg1 : i32, i32
  }
  func.func @transform_2(%arg0: i32, %arg1: i32, %arg2: i32) -> (i32, i32) {
    %c0_i32 = arith.constant 0 : i32
    %c0_i32_0 = arith.constant 0 : i32
    return %c0_i32, %arg1 : i32, i32
  }
  func.func @transform_3(%arg0: i32, %arg1: i32, %arg2: i32) -> (i32, i32) {
    %c0_i32 = arith.constant 0 : i32
    %c0_i32_0 = arith.constant 0 : i32
    return %c0_i32, %arg1 : i32, i32
  }
  func.func @transform_4(%arg0: i32, %arg1: i32, %arg2: i32) -> (i32, i32) {
    %c0_i32 = arith.constant 0 : i32
    return %arg0, %arg1 : i32, i32
  }
}

</mosaic_0001>

<bundles_post_ra>
// kernel: tpu_custom_call.1
= control target key start
LH: loop header
LB: loop body
LE: loop exit
PB: predicated region body
PF: predicated region fallthrough
CT: control target
= control target key end

     0   :  { %9 = vsyncpa [#allocation4], 0  ;;  %s567_s0 = inlined_call_operand.hbm [shape: bf16[32,256], index: 0, kind: input, shape index: {}]   ;;  %s568_s1 = inlined_call_operand.hbm [shape: bf16[256,128], index: 1, kind: input, shape index: {}]   ;;  %s569_s2 = inlined_call_operand.vmem [shape: f32[1,128], index: 2, kind: input, shape index: {}]   ;;  %s570_s3 = inlined_call_operand.vmem [shape: f32[1,128], index: 3, kind: input, shape index: {}]   ;;  %s571_s4 = inlined_call_operand.hbm [shape: f32[32,128], index: 4, kind: output, shape index: {}]  }
   0x1   :  { %10 = vsyncpa [#allocation7], 0 }
   0x2   :  { %11 = vsyncpa [#allocation5], 0  ;;  %s16_s17 = sshll.u32 %s567_s0, 4  ;;  %s514_s18 = smov [#allocation3]   ;;  %s17_s17 = int_to_ptr.hbm [resolvable:$true] %s16_s17 }
   0x3   :  { %s18_s19 = sshll.u32 %s514_s18, 4  ;;  %s29_s22 = sshll.u32 %s568_s1, 4  ;;  %s19_s19 = int_to_ptr.vmem [resolvable:$true] %s18_s19  ;;  %s30_s22 = int_to_ptr.hbm [resolvable:$true] %s29_s22 }
   0x4   :  { %s515_s23 = smov 128   ;;  %s516_s24 = smov 8  }
   0x5   :  { %24 = dma.hbm_to_vmem [thread:$0]  %s17_s17, 512, %s19_s19, [#allocation4], %s515_s23, %s515_s23, %s516_s24  }
   0x6   :  { %s517_s25 = smov [#allocation6]   ;;  %s518_s27 = smov 64  }
   0x7   :  { %s31_s26 = sshll.u32 %s517_s25, 4  ;;  %s519_s0 = smov 4   ;;  %s32_s26 = int_to_ptr.vmem [resolvable:$true] %s31_s26 }
   0x8   :  { %37 = dma.hbm_to_vmem [thread:$0]  %s30_s22, 2048, %s32_s26, [#allocation7], %s518_s27, %s518_s27, %s519_s0  }
   0x9   :  { %508 = dma.done.wait [#allocation4], 512  }
   0xa   :  { %509 = vsyncadd [#allocation4], 4294966784 }
   0xb   :  { %510 = dma.done.wait [#allocation7], 2048  }
   0xc   :  { %511 = vsyncadd [#allocation7], 4294965248  ;;  %v402_v0 = vld [vmem:[#allocation6 + $0x38] sm:$0xff]  ;;  %v401_v2 = vld [vmem:[#allocation6 + $0x30] sm:$0xff]  ;;  %s297_s7 = sshll.u32 %s571_s4, 4  ;;  %s298_s7 = int_to_ptr.hbm [resolvable:$true] %s297_s7 }
   0xd   :  { %v410_v1 = vld [vmem:[#allocation6 + $0x78] sm:$0xff]  ;;  %214 = vmatpush.bf16.msra.mxu0 %v402_v0  ;;  %411 = vmatpush.bf16.msra.mxu2 %v402_v0  ;;  %v409_v3 = vld [vmem:[#allocation6 + $0x70] sm:$0xff]  ;;  %v400_v4 = vld [vmem:[#allocation6 + $0x28] sm:$0xff] }
   0xe   :  { %233 = vmatpush.bf16.msra.mxu1 %v410_v1  ;;  %419 = vmatpush.bf16.msra.mxu3 %v410_v1  ;;  %v408_v5 = vld [vmem:[#allocation6 + $0x68] sm:$0xff]  ;;  %v399_v6 = vld [vmem:[#allocation6 + $0x20] sm:$0xff]  ;;  %v398_v8 = vld [vmem:[#allocation6 + $0x18] sm:$0xff] }
   0xf   :  { %v407_v7 = vld [vmem:[#allocation6 + $0x60] sm:$0xff]  ;;  %v406_v9 = vld [vmem:[#allocation6 + $0x58] sm:$0xff]  ;;  %v397_v10 = vld [vmem:[#allocation6 + $0x10] sm:$0xff] }
  0x10   :  { %v405_v11 = vld [vmem:[#allocation6 + $0x50] sm:$0xff]  ;;  %v396_v12 = vld [vmem:[#allocation6 + $0x8] sm:$0xff]  ;;  %v395_v14 = vld [vmem:[#allocation6] sm:$0xff] }
  0x11   :  { %215 = vmatpush.bf16.msra.mxu0 %v401_v2  ;;  %412 = vmatpush.bf16.msra.mxu2 %v401_v2  ;;  %v404_v13 = vld [vmem:[#allocation6 + $0x48] sm:$0xff]  ;;  %v403_v15 = vld [vmem:[#allocation6 + $0x40] sm:$0xff]  ;;  %v321_v18 = vld [vmem:[#allocation3 + $0x10] sm:$0xf] }
  0x12   :  { %234 = vmatpush.bf16.msra.mxu1 %v409_v3  ;;  %420 = vmatpush.bf16.msra.mxu3 %v409_v3  ;;  %v313_v16 = vld [vmem:[#allocation3] sm:$0xf]  ;;  %v392_v17 = vld [vmem:[#allocation3 + $0x4] sm:$0xf0]  ;;  %v394_v19 = vld [vmem:[#allocation3 + $0x14] sm:$0xf0] }
  0x13   :  { %v391_v20 = vld [vmem:[#allocation3 + $0x4] sm:$0xf]  ;;  %v315_v21 = vld [vmem:[#allocation3 + $0x8] sm:$0xf0]  ;;  %v393_v22 = vld [vmem:[#allocation3 + $0x14] sm:$0xf]  ;;  %v314_v24 = vor.u32 %v392_v17, %v313_v16  ;;  %v322_v25 = vor.u32 %v394_v19, %v321_v18 }
  0x14   :  { %v323_v23 = vld [vmem:[#allocation3 + $0x18] sm:$0xf0]  ;;  %v318_v26 = vor.u32 %v391_v20, %v315_v21  ;;  %v434_v29 = vld [vmem:[%s569_s2] ss:$0 sm:$0xff]  ;;  %s520_s2 = smov [#allocation8]  }
  0x15   :  { %216 = vmatpush.bf16.msra.mxu0 %v400_v4  ;;  %413 = vmatpush.bf16.msra.mxu2 %v400_v4  ;;  %v326_v27 = vor.u32 %v393_v22, %v323_v23  ;;  %v435_v32 = vld [vmem:[%s570_s3] ss:$0 sm:$0xff]  ;;  %s295_s3 = sshll.u32 %s520_s2, 4  ;;  %s296_s3 = int_to_ptr.vmem [resolvable:$true] %s295_s3 }
  0x16   :  { %235 = vmatpush.bf16.msra.mxu1 %v408_v5  ;;  %421 = vmatpush.bf16.msra.mxu3 %v408_v5 }
  0x19   :  { %217 = vmatpush.bf16.msra.mxu0 %v399_v6  ;;  %414 = vmatpush.bf16.msra.mxu2 %v399_v6 }
  0x1a   :  { %236 = vmatpush.bf16.msra.mxu1 %v407_v7  ;;  %422 = vmatpush.bf16.msra.mxu3 %v407_v7 }
  0x1d   :  { %218 = vmatpush.bf16.msra.mxu0 %v398_v8  ;;  %415 = vmatpush.bf16.msra.mxu2 %v398_v8 }
  0x1e   :  { %237 = vmatpush.bf16.msra.mxu1 %v406_v9  ;;  %423 = vmatpush.bf16.msra.mxu3 %v406_v9 }
  0x21   :  { %219 = vmatpush.bf16.msra.mxu0 %v397_v10  ;;  %416 = vmatpush.bf16.msra.mxu2 %v397_v10 }
  0x22   :  { %238 = vmatpush.bf16.msra.mxu1 %v405_v11  ;;  %424 = vmatpush.bf16.msra.mxu3 %v405_v11 }
  0x25   :  { %220 = vmatpush.bf16.msra.mxu0 %v396_v12  ;;  %417 = vmatpush.bf16.msra.mxu2 %v396_v12 }
  0x26   :  { %239 = vmatpush.bf16.msra.mxu1 %v404_v13  ;;  %425 = vmatpush.bf16.msra.mxu3 %v404_v13 }
  0x29   :  { %221 = vmatpush.bf16.msra.mxu0 %v395_v14  ;;  %418 = vmatpush.bf16.msra.mxu2 %v395_v14 }
  0x2a   :  { %240 = vmatpush.bf16.msra.mxu1 %v403_v15  ;;  %426 = vmatpush.bf16.msra.mxu3 %v403_v15 }
  0x2c   :  { %222 = vmatmul.bf16.vlgmr.msra.gmra.mxu0 %v314_v24  ;;  %227 = vmatmul.bf16.vlgmr.msra.gmra.mxu2 %v322_v25 }
  0x2d   :  { %241 = vmatmul.bf16.vlgmr.msra.gmra.mxu1 %v318_v26  ;;  %246 = vmatmul.bf16.vlgmr.msra.gmra.mxu3 %v326_v27 }
  0xa9   :  { %v223_v28 = vpop.f32.mrf.mxu0 }
  0xaa   :  { %v242_v30 = vpop.f32.mrf.mxu1 }
  0xab   :  { %v243_v31 = vadd.f32 %v242_v30, %v223_v28 }
  0xad   :  { %v271_v33 = vmul.f32 %v434_v29, %v243_v31 }
  0xaf   :  { %v279_v34 = vadd.f32 %v435_v32, %v271_v33  ;;  %v228_v35 = vpop.f32.mrf.mxu2 }
  0xb0   :  { %v247_v36 = vpop.f32.mrf.mxu3 }
  0xb1   :  { %v283_v37 = vmax.f32 %v279_v34, 0.0  ;;  %v248_v38 = vadd.f32 %v247_v36, %v228_v35  ;;  %v225_v39 = vpop.f32.mrf.mxu0 }
  0xb2   :  { %v244_v40 = vpop.f32.mrf.mxu1 }
  0xb3   :  { %287 = vst [vmem:[#allocation8] sm:$0xff] %v283_v37  ;;  %v273_v41 = vmul.f32 %v434_v29, %v248_v38  ;;  %v245_v42 = vadd.f32 %v244_v40, %v225_v39 }
  0xb5   :  { %v281_v43 = vadd.f32 %v435_v32, %v273_v41  ;;  %v272_v44 = vmul.f32 %v434_v29, %v245_v42 }
  0xb7   :  { %v285_v45 = vmax.f32 %v281_v43, 0.0  ;;  %v280_v46 = vadd.f32 %v435_v32, %v272_v44  ;;  %v230_v47 = vpop.f32.mrf.mxu2 }
  0xb8   :  { %v249_v48 = vpop.f32.mrf.mxu3 }
  0xb9   :  { %289 = vst [vmem:[#allocation8 + $0x10] sm:$0xff] %v285_v45  ;;  %v284_v49 = vmax.f32 %v280_v46, 0.0  ;;  %v250_v50 = vadd.f32 %v249_v48, %v230_v47 }
  0xbb   :  { %288 = vst [vmem:[#allocation8 + $0x8] sm:$0xff] %v284_v49  ;;  %v274_v51 = vmul.f32 %v434_v29, %v250_v50 }
  0xbd   :  { %v282_v52 = vadd.f32 %v435_v32, %v274_v51 }
  0xbf   :  { %v286_v53 = vmax.f32 %v282_v52, 0.0 }
  0xc1   :  { %290 = vst [vmem:[#allocation8 + $0x18] sm:$0xff] %v286_v53 }
  0xc2   :  { %303 = dma.vmem_to_hbm [thread:$0]  %s296_s3, 512, %s298_s7, [#allocation5], %s515_s23, %s515_s23, %s516_s24  }
  0xc3   :  { %512 = dma.done.wait [#allocation5], 512  }
  0xc4   :  { %513 = vsyncadd [#allocation5], 4294966784 }
  0xc5   :  { %308 = vsyncpa [#allocation4], 1 }
  0xc6   :  { %309 = vsyncpa [#allocation7], 1 }
  0xc7   :  { %310 = vsyncpa [#allocation5], 1 }

</bundles_post_ra>
